<compile_context>
chip_gen: v6e
topology: v6e:2x2x1
jax: 0.10.0
libtpu: 0.0.40
codegen_flags: <defaults>
</compile_context>

<pallas_src>
import math

import jax
import jax.numpy as jnp
from jax.experimental import pallas as pl
from jax.experimental.pallas import tpu as pltpu


def _fusion_kernel(x_ref, w_ref, o_ref):
    # x_ref/o_ref: (TILE_B, TILE_C); w_ref: (1, TILE_C) -> broadcast over rows.
    o_ref[...] = x_ref[...] * w_ref[...]


def _round_up(v, unit):
    return ((v + unit - 1) // unit) * unit


def fusion_layer(
    x,
    weights,
    *,
    target_block_bytes=2 * 1024 * 1024,   # ~2 MiB/block: safe on v5e/v6e/v7x defaults
    min_pallas_bytes=256 * 1024,          # below this, plain XLA multiply is faster
    force_pallas=False,
    donate_x=False,
):
    """x: (B, T, N, D); weights: (1, T, N, D). Returns x * weights (batch broadcast)."""
    assert weights.shape[0] == 1 and weights.shape[1:] == x.shape[1:], (
        x.shape, weights.shape)

    B = x.shape[0]
    C = math.prod(x.shape[1:])
    itemsize = jnp.dtype(x.dtype).itemsize
    total_bytes = B * C * itemsize

    # Tiny-problem bypass: kernel dispatch + DMA overhead dominates; let XLA fuse.
    if not force_pallas and total_bytes < min_pallas_bytes:
        return x * weights

    # Row-major flatten: (B, T, N, D) -> (B, C), (1, T, N, D) -> (1, C).
    # C is the lane-dense output axis (large multiple of 128 in practice).
    x2 = x.reshape(B, C)
    w2 = weights.reshape(1, C)

    # Native tile units: lanes always 128; sublanes depend on dtype packing.
    lane = 128
    sublane = {4: 8, 2: 16, 1: 32}.get(itemsize, 8)

    # Column tile: lane-aligned, sized so a sublane-high block ~= target bytes,
    # capped at C rounded up to 128 (Pallas masks the boundary block).
    max_cols = max(lane, (target_block_bytes // (sublane * itemsize)) // lane * lane)
    tile_c = min(max_cols, _round_up(C, lane))

    # Row tile: sublane-aligned, within the block-byte budget for this width,
    # capped at B rounded up to the sublane unit (boundary blocks are masked).
    rows_budget = max(sublane, (target_block_bytes // (tile_c * itemsize)))
    rows_budget = max(sublane, (rows_budget // sublane) * sublane)
    tile_b = min(rows_budget, _round_up(B, sublane))

    num_cb = pl.cdiv(C, tile_c)
    num_bb = pl.cdiv(B, tile_b)

    if num_cb >= 2:
        # Batch innermost: the weights block index (0, c) is constant across the
        # inner batch sweep, so the broadcast weights tile is not re-fetched.
        grid = (num_cb, num_bb)
        x_map = lambda c, b: (b, c)
        w_map = lambda c, b: (0, c)
    else:
        # Single column block: weights are fetched once regardless of ordering,
        # so put batch OUTERMOST to give v7x's core-sharded axis >=2 programs.
        grid = (num_bb, num_cb)
        x_map = lambda b, c: (b, c)
        w_map = lambda b, c: (0, c)

    x_spec = pl.BlockSpec((tile_b, tile_c), x_map)
    w_spec = pl.BlockSpec((1, tile_c), w_map)
    o_spec = pl.BlockSpec((tile_b, tile_c), x_map)

    cost = pl.CostEstimate(
        flops=B * C,
        transcendentals=0,
        bytes_accessed=(2 * B * C + C) * itemsize,
    )

    out2 = pl.pallas_call(
        _fusion_kernel,
        out_shape=jax.ShapeDtypeStruct((B, C), x.dtype),
        grid=grid,
        in_specs=[x_spec, w_spec],
        out_specs=o_spec,
        compiler_params=pltpu.CompilerParams(
            dimension_semantics=("parallel", "parallel"),
        ),
        cost_estimate=cost,
        input_output_aliases=({0: 0} if donate_x else {}),
    )(x2, w2)
    return out2.reshape(x.shape)


if __name__ == "__main__":
    # Module config: FusionLayer(out_window, n, out_dim)
    B, out_window, n, out_dim = 2, 8, 16, 4

    key = jax.random.PRNGKey(0)
    kx, kw = jax.random.split(key)

    x = jax.random.normal(kx, (B, out_window, n, out_dim), dtype=jnp.float32)
    # Deterministic parameter init (synthetic; no checkpoint load)
    weights = jax.random.normal(kw, (1, out_window, n, out_dim), dtype=jnp.float32)

    # Force the Pallas path at the demo size so the kernel itself is exercised.
    out = jax.block_until_ready(fusion_layer(x, weights, force_pallas=True))
    ref = x * weights
    assert out.shape == (B, out_window, n, out_dim)
    assert jnp.allclose(out, ref, atol=1e-6, rtol=1e-6)

    # Larger shape: exercises the multi-block path (2 batch blocks, batch-outermost
    # grid so v7x would shard across both TensorCores; boundary masking unused here).
    B2, T2, N2, D2 = 32, 8, 128, 32
    k2x, k2w = jax.random.split(jax.random.PRNGKey(1))
    x_big = jax.random.normal(k2x, (B2, T2, N2, D2), dtype=jnp.float32)
    w_big = jax.random.normal(k2w, (1, T2, N2, D2), dtype=jnp.float32)
    out_big = jax.block_until_ready(fusion_layer(x_big, w_big))
    assert jnp.allclose(out_big, x_big * w_big, atol=1e-6, rtol=1e-6)

    # Ragged shape: neither B nor C is 8/128-aligned -> pl.cdiv grid + masked
    # boundary blocks (the robustness fix from the review).
    B3, T3, N3, D3 = 5, 7, 33, 3
    k3x, k3w = jax.random.split(jax.random.PRNGKey(2))
    x_odd = jax.random.normal(k3x, (B3, T3, N3, D3), dtype=jnp.float32)
    w_odd = jax.random.normal(k3w, (1, T3, N3, D3), dtype=jnp.float32)
    out_odd = jax.block_until_ready(fusion_layer(x_odd, w_odd, force_pallas=True))
    assert jnp.allclose(out_odd, x_odd * w_odd, atol=1e-6, rtol=1e-6)

    # bf16 path: dtype-aware sublane unit (16) keeps stores sublane-dense.
    x_bf = x_big.astype(jnp.bfloat16)
    w_bf = w_big.astype(jnp.bfloat16)
    out_bf = jax.block_until_ready(fusion_layer(x_bf, w_bf))
    assert jnp.allclose(out_bf.astype(jnp.float32),
                        (x_bf * w_bf).astype(jnp.float32), atol=1e-2, rtol=1e-2)

    print("KERNEL_OK")
</pallas_src>

<mosaic_0001>
module attributes {stable_mosaic.version = 11 : i64} {
  func.func @_fusion_kernel(%arg0: i32, %arg1: i32, %arg2: memref<8x512xf32, #tpu.memory_space<vmem>>, %arg3: memref<1x512xf32, #tpu.memory_space<vmem>>, %arg4: memref<8x512xf32, #tpu.memory_space<vmem>>) attributes {dimension_semantics = [#tpu.dimension_semantics<parallel>, #tpu.dimension_semantics<parallel>], iteration_bounds = array<i64: 1, 1>, scalar_prefetch = 0 : i64, scratch_operands = 0 : i64, tpu.core_type = #tpu.core_type<tc>, window_params = [{transform_indices = @transform_0, window_bounds = array<i64: 8, 512>}, {transform_indices = @transform_1, window_bounds = array<i64: 1, 512>}, {transform_indices = @transform_2, window_bounds = array<i64: 8, 512>}]} {
    %c0 = arith.constant 0 : index
    %c0_0 = arith.constant 0 : index
    %0 = vector.load %arg2[%c0, %c0_0] : memref<8x512xf32, #tpu.memory_space<vmem>>, vector<8x512xf32>
    %c0_1 = arith.constant 0 : index
    %c0_2 = arith.constant 0 : index
    %1 = vector.load %arg3[%c0_1, %c0_2] : memref<1x512xf32, #tpu.memory_space<vmem>>, vector<1x512xf32>
    %2 = vector.broadcast %1 : vector<1x512xf32> to vector<8x512xf32>
    %3 = arith.mulf %0, %2 : vector<8x512xf32>
    %c0_3 = arith.constant 0 : index
    %c0_4 = arith.constant 0 : index
    %4 = vector.load %arg4[%c0_3, %c0_4] : memref<8x512xf32, #tpu.memory_space<vmem>>, vector<8x512xf32>
    tpu.vector_store %arg4[%c0_3, %c0_4], %3 {strides = array<i32>} : memref<8x512xf32, #tpu.memory_space<vmem>>, vector<8x512xf32>,
    return
  }
  func.func @transform_0(%arg0: i32, %arg1: i32) -> (i32, i32) {
    %c0_i32 = arith.constant 0 : i32
    return %arg0, %arg1 : i32, i32
  }
  func.func @transform_1(%arg0: i32, %arg1: i32) -> (i32, i32) {
    %c0_i32 = arith.constant 0 : i32
    %c0_i32_0 = arith.constant 0 : i32
    return %c0_i32, %arg1 : i32, i32
  }
  func.func @transform_2(%arg0: i32, %arg1: i32) -> (i32, i32) {
    %c0_i32 = arith.constant 0 : i32
    return %arg0, %arg1 : i32, i32
  }
}

</mosaic_0001>

<bundles_post_ra>
// kernel: tpu_custom_call.1
= control target key start
LH: loop header
LB: loop body
LE: loop exit
PB: predicated region body
PF: predicated region fallthrough
CT: control target
= control target key end

     0   :  { %7 = vsyncpa [#allocation3], 0  ;;  %s234_s0 = inlined_call_operand.hbm [shape: f32[2,512], index: 0, kind: input, shape index: {}]   ;;  %s235_s1 = inlined_call_operand.hbm [shape: f32[1,512], index: 1, kind: input, shape index: {}]   ;;  %s236_s2 = inlined_call_operand.hbm [shape: f32[2,512], index: 2, kind: output, shape index: {}]  }
   0x1   :  { %8 = vsyncpa [#allocation6], 0 }
   0x2   :  { %9 = vsyncpa [#allocation4], 0 }
   0x3   :  { %14 = vsyncadd [#allocation3], 384  ;;  %s198_s9 = smov [#allocation2]  }
   0x4   :  { %s15_s10 = sshll.u32 %s198_s9, 4  ;;  %s16_s10 = int_to_ptr.vmem [resolvable:$true] %s15_s10 }
   0x5   :  { %s140_s11 = scalar_lea.vmem %s16_s10, 128  ;;  %s144_s12 = scalar_lea.vmem %s16_s10, 512 }
   0x6   :  { %p141_p0 = scmp.ne.s32.totalorder %s16_s10, %s140_s11  ;;  %p145_p1 = scmp.lt.s32.totalorder %s16_s10, %s16_s10 }
   0x7   :  { %p146_p2 = scmp.lt.s32.totalorder %s144_s12, %s140_s11 }
   0x9   :  { %p147_p3 = por %p146_p2, %p145_p1 }
   0xb   :  { %p148_p4 = pnand %p147_p3, %p141_p0 }
   0xd   :  { %151 = shalt.err (!%p148_p4)
}
   0xe   :  { %s199_s13 = smov 128   ;;  %s200_s14 = smov 8  }
   0xf   :  { %21 = dma.hbm_to_vmem [thread:$0]  %s234_s0, 128, %s16_s10, [#allocation3], %s199_s13, %s199_s13, %s200_s14  }
  0x10   :  { %s201_s17 = smov [#allocation5]  }
  0x11   :  { %s28_s18 = sshll.u32 %s201_s17, 4  ;;  %s29_s18 = int_to_ptr.vmem [resolvable:$true] %s28_s18 }
  0x12   :  { %s160_s19 = scalar_lea.vmem %s29_s18, 64  ;;  %p165_p6 = scmp.lt.s32.totalorder %s29_s18, %s29_s18 }
  0x13   :  { %p161_p5 = scmp.ne.s32.totalorder %s29_s18, %s160_s19  ;;  %p166_p7 = scmp.lt.s32.totalorder %s160_s19, %s160_s19 }
  0x15   :  { %p167_p8 = por %p166_p7, %p165_p6 }
  0x17   :  { %p168_p9 = pnand %p167_p8, %p161_p5 }
  0x19   :  { %171 = shalt.err (!%p168_p9)
}
  0x1a   :  { %31 = dma.hbm_to_vmem [thread:$0]  %s235_s1, 64, %s29_s18, [#allocation6]  }
  0x1b   :  { %192 = dma.done.wait [#allocation3], 512  }
  0x1c   :  { %193 = vsyncadd [#allocation3], 4294966784 }
  0x1d   :  { %194 = dma.done.wait [#allocation6], 64  }
  0x1e   :  { %195 = vsyncadd [#allocation6], 4294967232  ;;  %v44_v0 = vlaneseq  ;;  %v202_v1 = vmov 1983009808   ;;  %v42_v9 = vld [vmem:[#allocation5] sm:$0xf] }
  0x1f   :  { %v65_v2 = vunpack.c.l.s4 %v202_v1  ;;  %v38_v19 = vld [vmem:[#allocation2] sm:$0xff]  ;;  %v39_v24 = vld [vmem:[#allocation2 + $0x8] sm:$0xff]  ;;  %v40_v25 = vld [vmem:[#allocation2 + $0x10] sm:$0xff] }
  0x20   :  { %v45_v3 = vshrl.u32 %v44_v0, 7  ;;  %v41_v26 = vld [vmem:[#allocation2 + $0x18] sm:$0xff] }
  0x21   :  { %v66_v4 = vunpack.c.0.s8 %v65_v2 }
  0x22   :  { %v46_v5 = vsub.s32 0, %v45_v3  ;;  %v50_v6 = vsub.s32 1, %v45_v3  ;;  %v54_v7 = vsub.s32 2, %v45_v3  ;;  %v58_v8 = vsub.s32 3, %v45_v3 }
  0x23   :  { %v69_v10 = vsub.s32 %v66_v4, %v45_v3 }
  0x24   :  { %v47_v11 = vrot.slane %v42_v9, %v46_v5  ;;  %v51_v12 = vrot.slane %v42_v9, %v50_v6  ;;  %v55_v13 = vrot.slane %v42_v9, %v54_v7  ;;  %v59_v14 = vrot.slane %v42_v9, %v58_v8 }
  0x26   :  { %v60_v15 = vcombine.low %v47_v11, %v51_v12  ;;  %v62_v16 = vcombine.low %v55_v13, %v59_v14  ;;  %v61_v17 = vcombine.high %v47_v11, %v51_v12  ;;  %v63_v18 = vcombine.high %v55_v13, %v59_v14 }
  0x28   :  { %v70_v20 = vrot.slane %v60_v15, %v69_v10  ;;  %v84_v21 = vrot.slane %v62_v16, %v69_v10  ;;  %v77_v22 = vrot.slane %v61_v17, %v69_v10  ;;  %v91_v23 = vrot.slane %v63_v18, %v69_v10 }
  0x2a   :  { %v92_v27 = vcombine.low %v70_v20, %v84_v21  ;;  %v93_v28 = vcombine.high %v70_v20, %v84_v21  ;;  %v94_v29 = vcombine.low %v77_v22, %v91_v23  ;;  %v95_v30 = vcombine.high %v77_v22, %v91_v23 }
  0x2c   :  { %v100_v31 = vmul.f32 %v92_v27, %v38_v19  ;;  %v101_v32 = vmul.f32 %v93_v28, %v39_v24  ;;  %v102_v33 = vmul.f32 %v94_v29, %v40_v25  ;;  %v103_v34 = vmul.f32 %v95_v30, %v41_v26 }
  0x2e   :  { %104 = vst [vmem:[#allocation7] sm:$0xff] %v100_v31  ;;  %105 = vst [vmem:[#allocation7 + $0x8] sm:$0xff] %v101_v32 }
  0x2f   :  { %106 = vst [vmem:[#allocation7 + $0x10] sm:$0xff] %v102_v33  ;;  %107 = vst [vmem:[#allocation7 + $0x18] sm:$0xff] %v103_v34 }
  0x30   :  { %112 = vsyncadd [#allocation4], 384  ;;  %s203_s0 = smov [#allocation7]  }
  0x31   :  { %s113_s1 = sshll.u32 %s203_s0, 4  ;;  %s114_s1 = int_to_ptr.vmem [resolvable:$true] %s113_s1 }
  0x32   :  { %s172_s22 = scalar_lea.vmem %s114_s1, 128  ;;  %s176_s23 = scalar_lea.vmem %s114_s1, 512 }
  0x33   :  { %p173_p10 = scmp.ne.s32.totalorder %s114_s1, %s172_s22  ;;  %p177_p11 = scmp.lt.s32.totalorder %s114_s1, %s114_s1 }
  0x34   :  { %p178_p12 = scmp.lt.s32.totalorder %s176_s23, %s172_s22 }
  0x36   :  { %p179_p13 = por %p178_p12, %p177_p11 }
  0x38   :  { %p180_p0 = pnand %p179_p13, %p173_p10 }
  0x3a   :  { %183 = shalt.err (!%p180_p0)
}
  0x3b   :  { %119 = dma.vmem_to_hbm [thread:$0]  %s114_s1, 128, %s236_s2, [#allocation4], %s199_s13, %s199_s13, %s200_s14  }
  0x3c   :  { %196 = dma.done.wait [#allocation4], 512  }
  0x3d   :  { %197 = vsyncadd [#allocation4], 4294966784 }
  0x3e   :  { %123 = vsyncpa [#allocation3], 1 }
  0x3f   :  { %124 = vsyncpa [#allocation6], 1 }
  0x40   :  { %125 = vsyncpa [#allocation4], 1 }

</bundles_post_ra>
